<compile_context>
chip_gen: v7x
topology: tpu7x:2x2x1
jax: 0.10.0
libtpu: 0.0.40
codegen_flags: <defaults>
</compile_context>

<pallas_src>
import functools

import jax
import jax.numpy as jnp
from jax.experimental import pallas as pl
from jax.experimental.pallas import tpu as pltpu


def _round_up(x, m):
    return (x + m - 1) // m * m


# ----------------------------------------------------------------------------
# Fused kernel: one row tile of flattened conv patches
#   p_ref : (tm, Kp)  bf16   patch rows (4x4 pixel window, zero-padded K)
#   wc_ref: (Kp, Fp)  bf16   packed 3x3 conv weights (zero rows for unused taps)
#   wp_ref: (Fp, Ep)  bf16   1x1 projection weights (zero-padded)
#   bb_ref: (1, Fp)   f32    backbone conv bias
#   bp_ref: (1, Ep)   f32    projection bias
#   o_ref : (tm, Ep)  bf16
# ----------------------------------------------------------------------------
def _hybrid_embed_kernel(p_ref, wc_ref, wp_ref, bb_ref, bp_ref, o_ref):
    # Backbone conv (as a single K=16C matmul) + bias + ReLU, f32 accumulation.
    feat = jnp.dot(p_ref[...], wc_ref[...], preferred_element_type=jnp.float32)
    feat = jnp.maximum(feat + bb_ref[...], 0.0)
    # 1x1 projection + bias.
    out = jnp.dot(feat.astype(jnp.bfloat16), wp_ref[...],
                  preferred_element_type=jnp.float32)
    o_ref[...] = (out + bp_ref[...]).astype(o_ref.dtype)


# ----------------------------------------------------------------------------
# One-time weight preparation (hoisted out of the per-call forward path).
# w_backbone: (9*C, F) flattened (kh, kw, c); w_proj: (F, E).
# Returns lane-dense, zero-padded, bf16 weight slabs + f32 biases.
# ----------------------------------------------------------------------------
def prepare_hybrid_embed_params(w_backbone, b_backbone, w_proj, b_proj, in_chans):
    C = in_chans
    K2C, F = w_backbone.shape
    assert K2C == 9 * C
    E = w_proj.shape[1]

    Kp = _round_up(16 * C, 128)   # 2x2 superpixels x 2x2 pixels x C channels
    Fp = _round_up(F, 128)
    Ep = _round_up(E, 128)

    # Packed conv weight: row index (di*2+dj)*4C + (a*2+d)*C + c corresponds to
    # padded-input pixel xp[2*ho + (2*di+a), 2*wo + (2*dj+d), c].  The 3x3
    # kernel position (kh, kw) maps to di=kh//2, a=kh%2, dj=kw//2, d=kw%2; the
    # 7 window positions outside the 3x3 support (and the K padding) stay zero.
    w = w_backbone.reshape(3, 3, C, F)
    wc = jnp.zeros((Kp, Fp), jnp.float32)
    for kh in range(3):
        for kw in range(3):
            di, a = kh // 2, kh % 2
            dj, d = kw // 2, kw % 2
            off = (di * 2 + dj) * 4 * C + (a * 2 + d) * C
            wc = wc.at[off:off + C, :F].set(w[kh, kw])
    wc = wc.astype(jnp.bfloat16)

    wp = jnp.zeros((Fp, Ep), jnp.float32).at[:F, :E].set(w_proj).astype(jnp.bfloat16)
    bb = jnp.zeros((1, Fp), jnp.float32).at[0, :F].set(b_backbone)
    bp = jnp.zeros((1, Ep), jnp.float32).at[0, :E].set(b_proj)
    return wc, wp, bb, bp


# ----------------------------------------------------------------------------
# Wrapper-side patch extraction (cheap XLA reshuffle): for every conv output
# position (ho, wo) gather the 4x4 padded-input pixel window, flattened to a
# lane-dense (B*Ho*Wo, 16C) slab so the kernel needs no in-kernel relayout.
# ----------------------------------------------------------------------------
def _extract_patches(x_nchw):
    B, C, H, W = x_nchw.shape
    assert H % 2 == 0 and W % 2 == 0
    Ho, Wo = H // 2, W // 2
    x = jnp.transpose(x_nchw, (0, 2, 3, 1))                     # NHWC
    xp = jnp.pad(x, ((0, 0), (1, 1), (1, 1), (0, 0)))           # conv padding=1
    Hs, Ws = Ho + 1, Wo + 1
    # space-to-depth by 2: y[b,i,j,(a*2+d)*C+c] = xp[b, 2i+a, 2j+d, c]
    y = xp.reshape(B, Hs, 2, Ws, 2, C).transpose(0, 1, 3, 2, 4, 5)
    y = y.reshape(B, Hs, Ws, 4 * C)
    # 2x2 superpixel window per output patch, concatenated along K.
    taps = [y[:, di:di + Ho, dj:dj + Wo, :] for di in range(2) for dj in range(2)]
    patches = jnp.concatenate(taps, axis=-1)                    # (B, Ho, Wo, 16C)
    return patches.reshape(B * Ho * Wo, 16 * C)


# ----------------------------------------------------------------------------
# HybridEmbed forward.
# x: (B, C_in, H, W) NCHW (like PyTorch). Returns (B, num_patches, embed_dim)
# in bf16 (f32 accumulation inside; cast at the caller if f32 is required).
# ----------------------------------------------------------------------------
@functools.partial(jax.jit, static_argnames=("embed_dim",))
def hybrid_embed_forward(x_nchw, wc, wp, bb, bp, *, embed_dim):
    B, C, H, W = x_nchw.shape
    Ho, Wo = H // 2, W // 2
    Kp, Fp = wc.shape
    Ep = wp.shape[1]
    E = embed_dim

    patches = _extract_patches(x_nchw).astype(jnp.bfloat16)     # (M, 16C)
    M, K = patches.shape

    # Fold batch into rows; grid over row tiles (parallel -> megacore-friendly).
    tm = min(256, _round_up(M, 8))
    Mp = _round_up(M, tm)
    patches = jnp.pad(patches, ((0, Mp - M), (0, Kp - K)))      # lane-dense K

    grid = (Mp // tm,)
    flops = 2 * Mp * Kp * Fp + 2 * Mp * Fp * Ep
    bytes_accessed = (Mp * Kp * 2 + Kp * Fp * 2 + Fp * Ep * 2
                      + Fp * 4 + Ep * 4 + Mp * Ep * 2)

    out = pl.pallas_call(
        _hybrid_embed_kernel,
        out_shape=jax.ShapeDtypeStruct((Mp, Ep), jnp.bfloat16),
        grid_spec=pltpu.PrefetchScalarGridSpec(
            num_scalar_prefetch=0,
            grid=grid,
            in_specs=[
                pl.BlockSpec((tm, Kp), lambda i: (i, 0)),        # streamed rows
                pl.BlockSpec((Kp, Fp), lambda i: (0, 0)),        # resident weights
                pl.BlockSpec((Fp, Ep), lambda i: (0, 0)),
                pl.BlockSpec((1, Fp), lambda i: (0, 0)),
                pl.BlockSpec((1, Ep), lambda i: (0, 0)),
            ],
            out_specs=pl.BlockSpec((tm, Ep), lambda i: (i, 0)),
        ),
        compiler_params=pltpu.CompilerParams(
            dimension_semantics=("parallel",)),
        cost_estimate=pl.CostEstimate(
            flops=flops, transcendentals=0, bytes_accessed=bytes_accessed),
    )(patches, wc, wp, bb, bp)

    # == proj(backbone(x)).flatten(2).transpose(1, 2); drop row/lane padding.
    return out[:M, :E].reshape(B, Ho * Wo, E)


# ----------------------------------------------------------------------------
# Pure-JAX reference (lax conv) for a correctness check.
# ----------------------------------------------------------------------------
def ref_forward(x_nchw, w_backbone, b_backbone, w_proj, b_proj):
    B, C, H, W = x_nchw.shape
    F = b_backbone.shape[0]
    x = jnp.transpose(x_nchw, (0, 2, 3, 1))
    w = w_backbone.reshape(3, 3, C, F)
    feat = jax.lax.conv_general_dilated(
        x, w, window_strides=(2, 2), padding=((1, 1), (1, 1)),
        dimension_numbers=("NHWC", "HWIO", "NHWC"))
    feat = jax.nn.relu(feat + b_backbone)
    proj = jnp.einsum("bhwc,ce->bhwe", feat, w_proj) + b_proj
    Bh, Ho, Wo, E = proj.shape
    return proj.reshape(Bh, Ho * Wo, E)


def _bf16_round(a):
    return a.astype(jnp.bfloat16).astype(jnp.float32)


if __name__ == "__main__":
    # Small shapes consistent with the module: img 16x16, in_chans=4,
    # backbone feature map 8x8 x feat_dim=16, embed_dim=32, num_patches=64.
    B, C_in, H, W = 2, 4, 16, 16
    feat_dim, embed_dim = 16, 32

    key = jax.random.PRNGKey(0)
    k1, k2, k3, k4, k5 = jax.random.split(key, 5)
    x = jax.random.normal(k1, (B, C_in, H, W), jnp.float32)
    w_backbone = 0.1 * jax.random.normal(k2, (3 * 3 * C_in, feat_dim), jnp.float32)
    b_backbone = 0.1 * jax.random.normal(k3, (feat_dim,), jnp.float32)
    w_proj = 0.1 * jax.random.normal(k4, (feat_dim, embed_dim), jnp.float32)
    b_proj = 0.1 * jax.random.normal(k5, (embed_dim,), jnp.float32)

    # Round inputs/weights to bf16 up front so the f32 reference sees the same
    # operands the bf16 MXU path consumes.
    x = _bf16_round(x)
    w_backbone = _bf16_round(w_backbone)
    w_proj = _bf16_round(w_proj)

    # One-time weight packing (outside the jitted per-call forward path).
    wc, wp, bb, bp = prepare_hybrid_embed_params(
        w_backbone, b_backbone, w_proj, b_proj, C_in)

    out = hybrid_embed_forward(x, wc, wp, bb, bp, embed_dim=embed_dim)
    out = jax.block_until_ready(out)

    assert out.shape == (B, (H // 2) * (W // 2), embed_dim), out.shape

    ref = ref_forward(x, w_backbone, b_backbone, w_proj, b_proj)
    assert jnp.allclose(out.astype(jnp.float32), ref, rtol=2e-2, atol=2e-2), \
        "mismatch vs reference"

    print("KERNEL_OK")
</pallas_src>

<mosaic_0001>
module attributes {stable_mosaic.version = 11 : i64} {
  func.func @_hybrid_embed_kernel(%arg0: i32, %arg1: memref<128x128xbf16, #tpu.memory_space<vmem>>, %arg2: memref<128x128xbf16, #tpu.memory_space<vmem>>, %arg3: memref<128x128xbf16, #tpu.memory_space<vmem>>, %arg4: memref<1x128xf32, #tpu.memory_space<vmem>>, %arg5: memref<1x128xf32, #tpu.memory_space<vmem>>, %arg6: memref<128x128xbf16, #tpu.memory_space<vmem>>) attributes {dimension_semantics = [#tpu.dimension_semantics<parallel>], iteration_bounds = array<i64: 1>, scalar_prefetch = 0 : i64, scratch_operands = 0 : i64, tpu.core_type = #tpu.core_type<tc>, window_params = [{transform_indices = @transform_0, window_bounds = array<i64: 128, 128>}, {pipeline_mode = #tpu.pipeline_mode<synchronous>, transform_indices = @transform_1, window_bounds = array<i64: 128, 128>}, {pipeline_mode = #tpu.pipeline_mode<synchronous>, transform_indices = @transform_2, window_bounds = array<i64: 128, 128>}, {pipeline_mode = #tpu.pipeline_mode<synchronous>, transform_indices = @transform_3, window_bounds = array<i64: 1, 128>}, {pipeline_mode = #tpu.pipeline_mode<synchronous>, transform_indices = @transform_4, window_bounds = array<i64: 1, 128>}, {transform_indices = @transform_5, window_bounds = array<i64: 128, 128>}]} {
    %c0 = arith.constant 0 : index
    %c0_0 = arith.constant 0 : index
    %0 = vector.load %arg1[%c0, %c0_0] : memref<128x128xbf16, #tpu.memory_space<vmem>>, vector<128x128xbf16>
    %c0_1 = arith.constant 0 : index
    %c0_2 = arith.constant 0 : index
    %1 = vector.load %arg2[%c0_1, %c0_2] : memref<128x128xbf16, #tpu.memory_space<vmem>>, vector<128x128xbf16>
    %cst = arith.constant dense<0.000000e+00> : vector<128x128xf32>
    %2 = tpu.matmul %0, %1, %cst {dimension_numbers = #tpu.dot_dimension_numbers<[1], [0], [0], [1], [0, 0, 1, 1], [], []>} : vector<128x128xbf16>, vector<128x128xbf16>, vector<128x128xf32> -> vector<128x128xf32>
    %c0_3 = arith.constant 0 : index
    %c0_4 = arith.constant 0 : index
    %3 = vector.load %arg4[%c0_3, %c0_4] : memref<1x128xf32, #tpu.memory_space<vmem>>, vector<1x128xf32>
    %4 = vector.broadcast %3 : vector<1x128xf32> to vector<128x128xf32>
    %5 = arith.addf %2, %4 : vector<128x128xf32>
    %cst_5 = arith.constant 0.000000e+00 : f32
    %6 = vector.broadcast %cst_5 : f32 to vector<128x128xf32>
    %7 = arith.maximumf %5, %6 : vector<128x128xf32>
    %8 = arith.truncf %7 : vector<128x128xf32> to vector<128x128xbf16>
    %c0_6 = arith.constant 0 : index
    %c0_7 = arith.constant 0 : index
    %9 = vector.load %arg3[%c0_6, %c0_7] : memref<128x128xbf16, #tpu.memory_space<vmem>>, vector<128x128xbf16>
    %cst_8 = arith.constant dense<0.000000e+00> : vector<128x128xf32>
    %10 = tpu.matmul %8, %9, %cst_8 {dimension_numbers = #tpu.dot_dimension_numbers<[1], [0], [0], [1], [0, 0, 1, 1], [], []>} : vector<128x128xbf16>, vector<128x128xbf16>, vector<128x128xf32> -> vector<128x128xf32>
    %c0_9 = arith.constant 0 : index
    %c0_10 = arith.constant 0 : index
    %11 = vector.load %arg5[%c0_9, %c0_10] : memref<1x128xf32, #tpu.memory_space<vmem>>, vector<1x128xf32>
    %12 = vector.broadcast %11 : vector<1x128xf32> to vector<128x128xf32>
    %13 = arith.addf %10, %12 : vector<128x128xf32>
    %14 = arith.truncf %13 : vector<128x128xf32> to vector<128x128xbf16>
    %c0_11 = arith.constant 0 : index
    %c0_12 = arith.constant 0 : index
    %15 = vector.load %arg6[%c0_11, %c0_12] : memref<128x128xbf16, #tpu.memory_space<vmem>>, vector<128x128xbf16>
    tpu.vector_store %arg6[%c0_11, %c0_12], %14 {strides = array<i32>} : memref<128x128xbf16, #tpu.memory_space<vmem>>, vector<128x128xbf16>,
    return
  }
  func.func @transform_0(%arg0: i32) -> (i32, i32) {
    %c0_i32 = arith.constant 0 : i32
    %c0_i32_0 = arith.constant 0 : i32
    return %arg0, %c0_i32 : i32, i32
  }
  func.func @transform_1(%arg0: i32) -> (i32, i32) {
    %c0_i32 = arith.constant 0 : i32
    %c0_i32_0 = arith.constant 0 : i32
    %c0_i32_1 = arith.constant 0 : i32
    return %c0_i32, %c0_i32_0 : i32, i32
  }
  func.func @transform_2(%arg0: i32) -> (i32, i32) {
    %c0_i32 = arith.constant 0 : i32
    %c0_i32_0 = arith.constant 0 : i32
    %c0_i32_1 = arith.constant 0 : i32
    return %c0_i32, %c0_i32_0 : i32, i32
  }
  func.func @transform_3(%arg0: i32) -> (i32, i32) {
    %c0_i32 = arith.constant 0 : i32
    %c0_i32_0 = arith.constant 0 : i32
    %c0_i32_1 = arith.constant 0 : i32
    return %c0_i32, %c0_i32_0 : i32, i32
  }
  func.func @transform_4(%arg0: i32) -> (i32, i32) {
    %c0_i32 = arith.constant 0 : i32
    %c0_i32_0 = arith.constant 0 : i32
    %c0_i32_1 = arith.constant 0 : i32
    return %c0_i32, %c0_i32_0 : i32, i32
  }
  func.func @transform_5(%arg0: i32) -> (i32, i32) {
    %c0_i32 = arith.constant 0 : i32
    %c0_i32_0 = arith.constant 0 : i32
    return %arg0, %c0_i32 : i32, i32
  }
}

</mosaic_0001>

<bundles_post_ra>
// kernel: hybrid_embed_forward.1
= control target key start
LH: loop header
LB: loop body
LE: loop exit
PB: predicated region body
PF: predicated region fallthrough
CT: control target
= control target key end

     0   :  { %s886_s1 = inlined_call_operand.vmem [shape: bf16[128,128], index: 1, kind: input, shape index: {}]   ;;  %s887_s0 = inlined_call_operand.vmem [shape: bf16[128,128], index: 0, kind: input, shape index: {}]   ;;  %s888_s2 = inlined_call_operand.vmem [shape: bf16[128,128], index: 2, kind: input, shape index: {}]   ;;  %s889_s3 = inlined_call_operand.vmem [shape: f32[1,128], index: 3, kind: input, shape index: {}]   ;;  %s890_s4 = inlined_call_operand.vmem [shape: f32[1,128], index: 4, kind: input, shape index: {}]   ;;  %s891_s5 = inlined_call_operand.vmem [shape: bf16[128,128], index: 5, kind: output, shape index: {}]  }
   0x1   :  { %v730_v0 = vld [vmem:[%s886_s1] sm:$0xff]   ;;  %v731_v1 = vld [vmem:[%s886_s1 + $0x8] sm:$0xff]   ;;  %v732_v2 = vld [vmem:[%s886_s1 + $0x10] sm:$0xff]  }
   0x2   :  { %666 = vmatprep.subr.bf16.mxu0 %v730_v0  ;;  %v733_v3 = vld [vmem:[%s886_s1 + $0x18] sm:$0xff]   ;;  %v738_v4 = vld [vmem:[%s887_s0] sm:$0xff]   ;;  %v735_v6 = vld [vmem:[%s886_s1 + $0x28] sm:$0xff]  }
   0x3   :  { %667 = vmatpush3.bf16.msra.mxu0 %v730_v0  ;;  %682 = vmatprep.mubr.bf16.mxu0 %v738_v4  ;;  %v734_v5 = vld [vmem:[%s886_s1 + $0x20] sm:$0xff]   ;;  %v747_v8 = vld [vmem:[%s888_s2 + $0x8] sm:$0xff]   ;;  %v736_v9 = vld [vmem:[%s886_s1 + $0x30] sm:$0xff]  }
   0x4   :  { %668 = vmatprep.subr.bf16.mxu0 %v731_v1  ;;  %v746_v7 = vld [vmem:[%s888_s2] sm:$0xff]   ;;  %v748_v10 = vld [vmem:[%s888_s2 + $0x10] sm:$0xff]   ;;  %v737_v11 = vld [vmem:[%s886_s1 + $0x38] sm:$0xff]  }
   0x5   :  { %698 = vmatprep.subr.bf16.mxu1 %v746_v7  ;;  %v749_v12 = vld [vmem:[%s888_s2 + $0x18] sm:$0xff]   ;;  %v750_v13 = vld [vmem:[%s888_s2 + $0x20] sm:$0xff]   ;;  %v739_v14 = vld [vmem:[%s887_s0 + $0x8] sm:$0xff]  }
   0x6   :  { %699 = vmatpush3.bf16.msra.mxu1 %v746_v7  ;;  %v740_v15 = vld [vmem:[%s887_s0 + $0x10] sm:$0xff]   ;;  %v751_v16 = vld [vmem:[%s888_s2 + $0x28] sm:$0xff]   ;;  %v741_v17 = vld [vmem:[%s887_s0 + $0x18] sm:$0xff]  }
   0x7   :  { %669 = vmatpush3.bf16.msra.mxu0 %v731_v1  ;;  %700 = vmatprep.subr.bf16.mxu1 %v747_v8  ;;  %v742_v18 = vld [vmem:[%s887_s0 + $0x20] sm:$0xff]   ;;  %v743_v19 = vld [vmem:[%s887_s0 + $0x28] sm:$0xff]   ;;  %v744_v20 = vld [vmem:[%s887_s0 + $0x30] sm:$0xff]  }
   0x8   :  { %670 = vmatprep.subr.bf16.mxu0 %v732_v2  ;;  %v745_v21 = vld [vmem:[%s887_s0 + $0x38] sm:$0xff]   ;;  %v752_v22 = vld [vmem:[%s888_s2 + $0x30] sm:$0xff]   ;;  %v529_v24 = vld [vmem:[%s889_s3] ss:$0 sm:$0xff] }
   0x9   :  { %v753_v23 = vld [vmem:[%s888_s2 + $0x38] sm:$0xff]  }
   0xa   :  { %701 = vmatpush3.bf16.msra.mxu1 %v747_v8 }
   0xb   :  { %671 = vmatpush3.bf16.msra.mxu0 %v732_v2  ;;  %702 = vmatprep.subr.bf16.mxu1 %v748_v10 }
   0xc   :  { %672 = vmatprep.subr.bf16.mxu0 %v733_v3 }
   0xe   :  { %703 = vmatpush3.bf16.msra.mxu1 %v748_v10 }
   0xf   :  { %673 = vmatpush3.bf16.msra.mxu0 %v733_v3  ;;  %704 = vmatprep.subr.bf16.mxu1 %v749_v12 }
  0x10   :  { %674 = vmatprep.subr.bf16.mxu0 %v734_v5 }
  0x12   :  { %705 = vmatpush3.bf16.msra.mxu1 %v749_v12 }
  0x13   :  { %675 = vmatpush3.bf16.msra.mxu0 %v734_v5  ;;  %706 = vmatprep.subr.bf16.mxu1 %v750_v13 }
  0x14   :  { %676 = vmatprep.subr.bf16.mxu0 %v735_v6 }
  0x16   :  { %707 = vmatpush3.bf16.msra.mxu1 %v750_v13 }
  0x17   :  { %677 = vmatpush3.bf16.msra.mxu0 %v735_v6  ;;  %708 = vmatprep.subr.bf16.mxu1 %v751_v16 }
  0x18   :  { %678 = vmatprep.subr.bf16.mxu0 %v736_v9 }
  0x1a   :  { %709 = vmatpush3.bf16.msra.mxu1 %v751_v16 }
  0x1b   :  { %679 = vmatpush3.bf16.msra.mxu0 %v736_v9  ;;  %710 = vmatprep.subr.bf16.mxu1 %v752_v22 }
  0x1c   :  { %680 = vmatprep.subr.bf16.mxu0 %v737_v11 }
  0x1e   :  { %711 = vmatpush3.bf16.msra.mxu1 %v752_v22 }
  0x1f   :  { %681 = vmatpush3.bf16.msra.mxu0 %v737_v11  ;;  %712 = vmatprep.subr.bf16.mxu1 %v753_v23 }
  0x22   :  { %683 = vmatmul.mubr.bf16.vlgmr.msra.gmra.mrb[0].mxu0 %v739_v14  ;;  %713 = vmatpush3.bf16.msra.mxu1 %v753_v23 }
  0x23   :  { %686 = vmatprep.mubr.bf16.mxu0 %v740_v15 }
  0x2a   :  { %687 = vmatmul.mubr.bf16.gmra.mrb[4].mxu0 %v741_v17 }
  0x2b   :  { %690 = vmatprep.mubr.bf16.mxu0 %v742_v18  ;;  %v546_v18 = vld [vmem:[%s890_s4] ss:$0 sm:$0xff] }
  0x32   :  { %691 = vmatmul.mubr.bf16.gmra.mrb[8].mxu0 %v743_v19 }
  0x33   :  { %694 = vmatprep.mubr.bf16.mxu0 %v744_v20 }
  0x3a   :  { %695 = vmatmul.mubr.bf16.gmra.mrb[12].mxu0 %v745_v21 }
  0xf5   :  { %v684_v25 = vpop.f32.mrb[0].mxu0 }
  0xf6   :  { %v199_v26 = vadd.f32 %v684_v25, %v529_v24  ;;  %v190_v27 = vpop.f32.mrb[1].mxu0 }
  0xf7   :  { %v191_v28 = vadd.f32 %v529_v24, %v190_v27  ;;  %v685_v29 = vpop.f32.mrb[2].mxu0 }
  0xf8   :  { %v202_v30 = vadd.f32 %v685_v29, %v529_v24  ;;  %v193_v31 = vpop.f32.mrb[3].mxu0  ;;  %v255_v33 = vmax.f32 %v199_v26, 0.0 }
  0xf9   :  { %v194_v32 = vadd.f32 %v529_v24, %v193_v31  ;;  %v253_v35 = vmax.f32 %v191_v28, 0.0 }
  0xfa   :  { %v256_v34 = vmax.f32 %v202_v30, 0.0 }
  0xfb   :  { %v254_v36 = vmax.f32 %v194_v32, 0.0 }
  0xfc   :  { %v270_v37 = vpack.c.bf16 %v256_v34, %v255_v33 }
  0xfd   :  { %v688_v38 = vpop.f32.mrb[4].mxu0  ;;  %v269_v39 = vpack.c.bf16 %v254_v36, %v253_v35 }
  0xfe   :  { %v215_v40 = vadd.f32 %v688_v38, %v529_v24  ;;  %v206_v41 = vpop.f32.mrb[5].mxu0 }
  0xff   :  { %v207_v42 = vadd.f32 %v529_v24, %v206_v41  ;;  %v689_v43 = vpop.f32.mrb[6].mxu0  ;;  %714 = vmatprep.mubr.bf16.mxu1 %v269_v39 }
 0x100   :  { %v218_v44 = vadd.f32 %v689_v43, %v529_v24  ;;  %v209_v45 = vpop.f32.mrb[7].mxu0  ;;  %715 = vmatmul.mubr.bf16.vlgmr.msra.gmra.mrb[0].mxu1 %v270_v37  ;;  %v259_v47 = vmax.f32 %v215_v40, 0.0 }
 0x101   :  { %v210_v46 = vadd.f32 %v529_v24, %v209_v45  ;;  %v257_v49 = vmax.f32 %v207_v42, 0.0 }
 0x102   :  { %v260_v48 = vmax.f32 %v218_v44, 0.0 }
 0x103   :  { %v258_v50 = vmax.f32 %v210_v46, 0.0 }
 0x104   :  { %v272_v51 = vpack.c.bf16 %v260_v48, %v259_v47 }
 0x105   :  { %v271_v52 = vpack.c.bf16 %v258_v50, %v257_v49  ;;  %v692_v53 = vpop.f32.mrb[8].mxu0 }
 0x106   :  { %v231_v54 = vadd.f32 %v692_v53, %v529_v24  ;;  %v222_v55 = vpop.f32.mrb[9].mxu0 }
 0x107   :  { %v223_v56 = vadd.f32 %v529_v24, %v222_v55  ;;  %v693_v57 = vpop.f32.mrb[10].mxu0  ;;  %718 = vmatprep.mubr.bf16.mxu1 %v271_v52 }
 0x108   :  { %v234_v58 = vadd.f32 %v693_v57, %v529_v24  ;;  %v225_v59 = vpop.f32.mrb[11].mxu0  ;;  %719 = vmatmul.mubr.bf16.gmra.mrb[4].mxu1 %v272_v51  ;;  %v263_v61 = vmax.f32 %v231_v54, 0.0 }
 0x109   :  { %v226_v60 = vadd.f32 %v529_v24, %v225_v59  ;;  %v261_v63 = vmax.f32 %v223_v56, 0.0 }
 0x10a   :  { %v264_v62 = vmax.f32 %v234_v58, 0.0 }
 0x10b   :  { %v262_v0 = vmax.f32 %v226_v60, 0.0 }
 0x10c   :  { %v274_v1 = vpack.c.bf16 %v264_v62, %v263_v61 }
 0x10d   :  { %v273_v2 = vpack.c.bf16 %v262_v0, %v261_v63  ;;  %v696_v3 = vpop.f32.mrb[12].mxu0 }
 0x10e   :  { %v247_v4 = vadd.f32 %v696_v3, %v529_v24  ;;  %v238_v5 = vpop.f32.mrb[13].mxu0 }
 0x10f   :  { %v239_v6 = vadd.f32 %v529_v24, %v238_v5  ;;  %v697_v7 = vpop.f32.mrb[14].mxu0  ;;  %722 = vmatprep.mubr.bf16.mxu1 %v273_v2 }
 0x110   :  { %v250_v8 = vadd.f32 %v697_v7, %v529_v24  ;;  %v241_v9 = vpop.f32.mrb[15].mxu0  ;;  %723 = vmatmul.mubr.bf16.gmra.mrb[8].mxu1 %v274_v1  ;;  %v267_v11 = vmax.f32 %v247_v4, 0.0 }
 0x111   :  { %v242_v10 = vadd.f32 %v529_v24, %v241_v9  ;;  %v265_v13 = vmax.f32 %v239_v6, 0.0 }
 0x112   :  { %v268_v12 = vmax.f32 %v250_v8, 0.0 }
 0x113   :  { %v266_v14 = vmax.f32 %v242_v10, 0.0 }
 0x114   :  { %v276_v15 = vpack.c.bf16 %v268_v12, %v267_v11 }
 0x115   :  { %v275_v16 = vpack.c.bf16 %v266_v14, %v265_v13 }
 0x117   :  { %726 = vmatprep.mubr.bf16.mxu1 %v275_v16 }
 0x118   :  { %727 = vmatmul.mubr.bf16.gmra.mrb[12].mxu1 %v276_v15 }
 0x1d3   :  { %v716_v17 = vpop.f32.mrb[0].mxu1 }
 0x1d4   :  { %v382_v19 = vpop.f32.mrb[1].mxu1  ;;  %v391_v21 = vadd.f32 %v716_v17, %v546_v18 }
 0x1d5   :  { %v717_v20 = vpop.f32.mrb[2].mxu1  ;;  %v383_v25 = vadd.f32 %v546_v18, %v382_v19 }
 0x1d6   :  { %v394_v22 = vadd.f32 %v717_v20, %v546_v18  ;;  %v385_v23 = vpop.f32.mrb[3].mxu1 }
 0x1d7   :  { %v386_v24 = vadd.f32 %v546_v18, %v385_v23 }
 0x1d8   :  { %v595_v26 = vpack.c.bf16 %v394_v22, %v391_v21 }
 0x1d9   :  { %v590_v27 = vpack.c.bf16 %v386_v24, %v383_v25 }
 0x1da   :  { %627 = vst [vmem:[%s891_s5 + $0x8] sm:$0xff] %v595_v26  }
 0x1db   :  { %591 = vst [vmem:[%s891_s5] sm:$0xff] %v590_v27   ;;  %v720_v28 = vpop.f32.mrb[4].mxu1 }
 0x1dc   :  { %v398_v29 = vpop.f32.mrb[5].mxu1  ;;  %v407_v31 = vadd.f32 %v720_v28, %v546_v18 }
 0x1dd   :  { %v721_v30 = vpop.f32.mrb[6].mxu1  ;;  %v399_v34 = vadd.f32 %v546_v18, %v398_v29 }
 0x1de   :  { %v410_v32 = vadd.f32 %v721_v30, %v546_v18  ;;  %v401_v33 = vpop.f32.mrb[7].mxu1 }
 0x1df   :  { %v402_v35 = vadd.f32 %v546_v18, %v401_v33 }
 0x1e0   :  { %v605_v36 = vpack.c.bf16 %v410_v32, %v407_v31 }
 0x1e1   :  { %v600_v37 = vpack.c.bf16 %v402_v35, %v399_v34 }
 0x1e2   :  { %629 = vst [vmem:[%s891_s5 + $0x18] sm:$0xff] %v605_v36  }
 0x1e3   :  { %628 = vst [vmem:[%s891_s5 + $0x10] sm:$0xff] %v600_v37   ;;  %v724_v38 = vpop.f32.mrb[8].mxu1 }
 0x1e4   :  { %v414_v39 = vpop.f32.mrb[9].mxu1  ;;  %v423_v41 = vadd.f32 %v724_v38, %v546_v18 }
 0x1e5   :  { %v725_v40 = vpop.f32.mrb[10].mxu1  ;;  %v415_v44 = vadd.f32 %v546_v18, %v414_v39 }
 0x1e6   :  { %v426_v42 = vadd.f32 %v725_v40, %v546_v18  ;;  %v417_v43 = vpop.f32.mrb[11].mxu1 }
 0x1e7   :  { %v418_v45 = vadd.f32 %v546_v18, %v417_v43 }
 0x1e8   :  { %v615_v46 = vpack.c.bf16 %v426_v42, %v423_v41 }
 0x1e9   :  { %v610_v47 = vpack.c.bf16 %v418_v45, %v415_v44 }
 0x1ea   :  { %631 = vst [vmem:[%s891_s5 + $0x28] sm:$0xff] %v615_v46  }
 0x1eb   :  { %630 = vst [vmem:[%s891_s5 + $0x20] sm:$0xff] %v610_v47   ;;  %v728_v48 = vpop.f32.mrb[12].mxu1 }
 0x1ec   :  { %v430_v49 = vpop.f32.mrb[13].mxu1  ;;  %v439_v51 = vadd.f32 %v728_v48, %v546_v18 }
 0x1ed   :  { %v729_v50 = vpop.f32.mrb[14].mxu1  ;;  %v431_v54 = vadd.f32 %v546_v18, %v430_v49 }
 0x1ee   :  { %v442_v52 = vadd.f32 %v729_v50, %v546_v18  ;;  %v433_v53 = vpop.f32.mrb[15].mxu1 }
 0x1ef   :  { %v434_v55 = vadd.f32 %v546_v18, %v433_v53 }
 0x1f0   :  { %v625_v56 = vpack.c.bf16 %v442_v52, %v439_v51 }
 0x1f1   :  { %v620_v57 = vpack.c.bf16 %v434_v55, %v431_v54 }
 0x1f2   :  { %633 = vst [vmem:[%s891_s5 + $0x38] sm:$0xff] %v625_v56  }
 0x1f3   :  { %632 = vst [vmem:[%s891_s5 + $0x30] sm:$0xff] %v620_v57  }

</bundles_post_ra>
